<compile_context>
chip_gen: v7x
topology: tpu7x:2x2x1
jax: 0.10.0
libtpu: 0.0.40
codegen_flags: <defaults>
</compile_context>

<pallas_src>
import math

import jax
import jax.numpy as jnp
from jax.experimental import pallas as pl
from jax.experimental.pallas import tpu as pltpu

IGNORE_INDEX = 255
THRESH_P = 0.7


def _cdiv(a, b):
    return -(-a // b)


def _round_up(a, b):
    return _cdiv(a, b) * b


def _choose_tile_p(hw, c, itemsize, n):
    """Largest 128-multiple pixel tile that fits the VMEM budget (v7x-safe)."""
    pack = max(8, 32 // itemsize)                # sublane packing for the dtype
    c_pad = _round_up(c, pack)                   # padded class/sublane extent
    # one buffer of (logits block + labels block + loss block), bytes per lane
    bytes_per_lane = c_pad * itemsize + 2 * 8 * 4
    budget = 32 << 20                            # double-buffered streaming budget
    cap = max(128, (budget // (2 * bytes_per_lane)) // 128 * 128)
    cap = min(cap, 32768)                        # review sweep upper bound
    tile = min(cap, _round_up(hw, 128))
    # keep >= ~8 total grid steps (v7x has 2 TCs sharing the 'parallel' grid)
    min_steps = 8
    if n * _cdiv(hw, tile) < min_steps:
        tiles_wanted = _cdiv(min_steps, n)
        tile = min(tile, max(128, _round_up(_cdiv(hw, tiles_wanted), 128)))
    return tile


def _make_ce_ohem_kernel(hw, tile_p, thresh_val, ignore_index):
    def kernel(logits_ref, labels_ref, loss_ref, part_ref):
        # logits_ref: (1, C, tp) caller dtype (f32/bf16), labels_ref: (1, 1, tp) i32
        logits = logits_ref[0].astype(jnp.float32)          # (C, tp)
        labels = labels_ref[0]                               # (1, tp)

        # numerically stable softmax pieces; reuse the shifted logits for the gather
        m = jnp.max(logits, axis=0, keepdims=True)            # (1, tp)
        shift = logits - m                                     # (C, tp)
        sumexp = jnp.sum(jnp.exp(shift), axis=0, keepdims=True)

        classes = jax.lax.broadcasted_iota(jnp.int32, shift.shape, 0)
        shift_true = jnp.sum(jnp.where(classes == labels, shift, 0.0),
                             axis=0, keepdims=True)            # (1, tp)

        valid = labels != ignore_index
        loss = jnp.where(valid, jnp.log(sumexp) - shift_true, 0.0)
        loss_ref[0] = loss

        # fused OHEM partial reductions; mask padded tail lanes of the last tile
        t = pl.program_id(1)
        pos = t * tile_p + jax.lax.broadcasted_iota(jnp.int32, (1, tile_p), 1)
        in_bounds = pos < hw
        valid_ib = jnp.logical_and(in_bounds, valid)
        hard = jnp.logical_and(in_bounds, loss > thresh_val)

        valid_cnt = jnp.sum(valid_ib.astype(jnp.float32))      # <= 32768, exact in f32
        hard_cnt = jnp.sum(hard.astype(jnp.float32))
        hard_sum = jnp.sum(jnp.where(hard, loss, 0.0))

        lane = jax.lax.broadcasted_iota(jnp.int32, (8, 128), 1)
        pvec = jnp.where(lane == 0, valid_cnt,
               jnp.where(lane == 1, hard_cnt,
               jnp.where(lane == 2, hard_sum, 0.0)))
        part_ref[0, 0] = pvec
    return kernel


def per_pixel_ce_ohem(logits_ncp, labels_n1p, tile_p, thresh_val, ignore_index):
    """Returns (loss (N,1,HW) f32, partials (N,T,8,128) f32)."""
    N, C, HW = logits_ncp.shape
    T = _cdiv(HW, tile_p)
    grid = (N, T)
    kernel = _make_ce_ohem_kernel(HW, tile_p, thresh_val, ignore_index)

    itemsize = logits_ncp.dtype.itemsize
    pack = max(8, 32 // itemsize)
    c_pad = _round_up(C, pack)
    # one buffer: logits + labels + loss blocks (+ tiny partials block)
    block_bytes = (c_pad * tile_p * itemsize) + 2 * (8 * tile_p * 4) + 8 * 128 * 4
    vmem_limit = max(16 << 20, 2 * block_bytes + (8 << 20))

    bytes_accessed = (logits_ncp.size * itemsize + labels_n1p.size * 4
                      + N * HW * 4 + N * T * 8 * 128 * 4)
    cost = pl.CostEstimate(
        flops=7 * N * C * HW,
        transcendentals=N * C * HW + N * HW,
        bytes_accessed=bytes_accessed,
    )

    return pl.pallas_call(
        kernel,
        out_shape=(
            jax.ShapeDtypeStruct((N, 1, HW), jnp.float32),
            jax.ShapeDtypeStruct((N, T, 8, 128), jnp.float32),
        ),
        grid_spec=pltpu.PrefetchScalarGridSpec(
            num_scalar_prefetch=0,
            grid=grid,
            in_specs=[
                pl.BlockSpec((1, C, tile_p), lambda n, t: (n, 0, t)),
                pl.BlockSpec((1, 1, tile_p), lambda n, t: (n, 0, t)),
            ],
            out_specs=(
                pl.BlockSpec((1, 1, tile_p), lambda n, t: (n, 0, t)),
                pl.BlockSpec((1, 1, 8, 128), lambda n, t: (n, t, 0, 0)),
            ),
        ),
        compiler_params=pltpu.CompilerParams(
            dimension_semantics=("parallel", "parallel"),
            vmem_limit_bytes=int(vmem_limit)),
        cost_estimate=cost,
    )(logits_ncp, labels_n1p)


def ohem_ce_loss(logits_nchw, labels_nhw, thresh=THRESH_P,
                 ignore_index=IGNORE_INDEX):
    N, C, H, W = logits_nchw.shape
    HW = H * W

    # free views only — no transpose, no pad, no dtype copy of the big tensor
    logits_ncp = logits_nchw.reshape(N, C, HW)
    labels_n1p = labels_nhw.reshape(N, 1, HW).astype(jnp.int32)

    tile_p = _choose_tile_p(HW, C, logits_nchw.dtype.itemsize, N)
    thresh_val = float(-math.log(thresh))

    loss, partials = per_pixel_ce_ohem(logits_ncp, labels_n1p, tile_p,
                                       thresh_val, ignore_index)

    # totals from fused per-tile partials (counts cast to int32 for exact sums)
    valid_total = jnp.sum(partials[:, :, 0, 0].astype(jnp.int32))
    n_hard = jnp.sum(partials[:, :, 0, 1].astype(jnp.int32))
    hard_sum = jnp.sum(partials[:, :, 0, 2])
    n_min = valid_total // 16

    loss_flat = loss.reshape(-1)

    def topk_branch(_):
        # exact mean of the top-n_min losses WITHOUT a sort/top_k:
        # loss >= 0, so its f32 bit pattern orders identically as int32 ->
        # binary-search the bits of the n_min-th largest value (31 streaming
        # count passes), then a closed-form tie-aware sum.
        bits = jax.lax.bitcast_convert_type(loss_flat, jnp.int32)
        nm = jnp.maximum(n_min, 1)

        def body(_, state):
            lo, hi = state
            mid = lo + (hi - lo) // 2
            c = jnp.sum((bits >= mid).astype(jnp.int32))
            feasible = c >= nm
            return (jnp.where(feasible, mid, lo), jnp.where(feasible, hi, mid))

        lo, _ = jax.lax.fori_loop(
            0, 32, body, (jnp.int32(0), jnp.int32(0x7F800001)))
        kth = jax.lax.bitcast_convert_type(lo, jnp.float32)

        gt = loss_flat > kth
        cnt_gt = jnp.sum(gt.astype(jnp.int32))
        sum_gt = jnp.sum(jnp.where(gt, loss_flat, 0.0))
        top_sum = sum_gt + (nm - cnt_gt).astype(jnp.float32) * kth
        return top_sum / nm.astype(jnp.float32)

    def hard_branch(_):
        # 0/0 -> NaN intentionally matches PyTorch's mean over an empty selection.
        return hard_sum / n_hard.astype(jnp.float32)

    return jax.lax.cond(n_hard < n_min, topk_branch, hard_branch, operand=None)


def _reference(logits, labels):
    """Pure-JAX reference of the same math (sort-based top-k)."""
    N, C, H, W = logits.shape
    lp = jnp.transpose(logits, (0, 2, 3, 1)).reshape(-1, C).astype(jnp.float32)
    lb = labels.reshape(-1)
    logp = jax.nn.log_softmax(lp, axis=-1)
    l = -jnp.take_along_axis(logp, jnp.clip(lb, 0, C - 1)[:, None], axis=-1)[:, 0]
    l = jnp.where(lb != IGNORE_INDEX, l, 0.0)
    thr = -jnp.log(jnp.float32(THRESH_P))
    n_min = jnp.sum(lb != IGNORE_INDEX) // 16
    hard = l > thr
    n_hard = jnp.sum(hard)
    mean_hard = jnp.sum(jnp.where(hard, l, 0.0)) / n_hard
    srt = jnp.sort(l)[::-1]
    topk = jnp.cumsum(srt)[jnp.maximum(n_min - 1, 0)] / jnp.maximum(n_min, 1)
    return jnp.where(n_hard < n_min, topk, mean_hard)


if __name__ == "__main__":
    key = jax.random.PRNGKey(0)
    k_logits, k_labels, k_ignore = jax.random.split(key, 3)

    N, C, H, W = 2, 4, 16, 16
    logits = jax.random.normal(k_logits, (N, C, H, W), dtype=jnp.float32)
    labels = jax.random.randint(k_labels, (N, H, W), 0, C, dtype=jnp.int32)
    ignore_mask = jax.random.uniform(k_ignore, (N, H, W)) < 0.1
    labels = jnp.where(ignore_mask, IGNORE_INDEX, labels)

    fn = jax.jit(ohem_ce_loss)

    # test 1: "hard" regime -> threshold branch
    out1 = fn(logits, labels)
    jax.block_until_ready(out1)
    ref1 = _reference(logits, labels)
    assert jnp.allclose(out1, ref1, rtol=1e-4, atol=1e-5), (out1, ref1)

    # test 2: "easy" regime (labels = argmax, sharp logits) -> top-k fallback
    easy_labels = jnp.where(ignore_mask, IGNORE_INDEX,
                            jnp.argmax(logits, axis=1).astype(jnp.int32))
    easy_logits = logits * 10.0
    out2 = fn(easy_logits, easy_labels)
    jax.block_until_ready(out2)
    ref2 = _reference(easy_logits, easy_labels)
    assert jnp.allclose(out2, ref2, rtol=1e-4, atol=1e-5), (out2, ref2)

    print("KERNEL_OK")
</pallas_src>

<mosaic_0001>
module attributes {stable_mosaic.version = 11 : i64} {
  func.func @kernel(%arg0: i32, %arg1: i32, %arg2: memref<1x4x128xf32, #tpu.memory_space<vmem>>, %arg3: memref<1x1x128xi32, #tpu.memory_space<vmem>>, %arg4: memref<1x1x128xf32, #tpu.memory_space<vmem>>, %arg5: memref<1x1x8x128xf32, #tpu.memory_space<vmem>>) attributes {dimension_semantics = [#tpu.dimension_semantics<parallel>, #tpu.dimension_semantics<parallel>], iteration_bounds = array<i64: 2, 2>, scalar_prefetch = 0 : i64, scratch_operands = 0 : i64, tpu.core_type = #tpu.core_type<tc>, window_params = [{transform_indices = @transform_0, window_bounds = array<i64: 1, 4, 128>}, {transform_indices = @transform_1, window_bounds = array<i64: 1, 1, 128>}, {transform_indices = @transform_2, window_bounds = array<i64: 1, 1, 128>}, {transform_indices = @transform_3, window_bounds = array<i64: 1, 1, 8, 128>}]} {
    %c0 = arith.constant 0 : index
    %c0_0 = arith.constant 0 : index
    %c0_1 = arith.constant 0 : index
    %0 = vector.load %arg2[%c0, %c0_0, %c0_1] : memref<1x4x128xf32, #tpu.memory_space<vmem>>, vector<1x4x128xf32>
    %1 = vector.shape_cast %0 : vector<1x4x128xf32> to vector<4x128xf32>
    %c0_2 = arith.constant 0 : index
    %c0_3 = arith.constant 0 : index
    %c0_4 = arith.constant 0 : index
    %2 = vector.load %arg3[%c0_2, %c0_3, %c0_4] : memref<1x1x128xi32, #tpu.memory_space<vmem>>, vector<1x1x128xi32>
    %3 = vector.shape_cast %2 : vector<1x1x128xi32> to vector<1x128xi32>
    %cst = arith.constant dense<0xFF800000> : vector<128xf32>
    %4 = vector.multi_reduction <maximumf>, %1, %cst [0] : vector<4x128xf32> to vector<128xf32>
    %5 = vector.shape_cast %4 : vector<128xf32> to vector<1x128xf32>
    %6 = vector.broadcast %5 : vector<1x128xf32> to vector<4x128xf32>
    %7 = arith.subf %1, %6 : vector<4x128xf32>
    %8 = math.exp %7 : vector<4x128xf32>
    %cst_5 = arith.constant dense<0.000000e+00> : vector<128xf32>
    %9 = vector.multi_reduction <add>, %8, %cst_5 [0] : vector<4x128xf32> to vector<128xf32>
    %10 = vector.shape_cast %9 : vector<128xf32> to vector<1x128xf32>
    %11 = tpu.iota {dimensions = array<i32: 0>} : vector<4x128xi32>
    %12 = vector.broadcast %3 : vector<1x128xi32> to vector<4x128xi32>
    %13 = arith.cmpi eq, %11, %12 : vector<4x128xi32>
    %cst_6 = arith.constant 0.000000e+00 : f32
    %14 = vector.broadcast %cst_6 : f32 to vector<4x128xf32>
    %15 = arith.select %13, %7, %14 : vector<4x128xi1>, vector<4x128xf32>
    %cst_7 = arith.constant dense<0.000000e+00> : vector<128xf32>
    %16 = vector.multi_reduction <add>, %15, %cst_7 [0] : vector<4x128xf32> to vector<128xf32>
    %17 = vector.shape_cast %16 : vector<128xf32> to vector<1x128xf32>
    %c255_i32 = arith.constant 255 : i32
    %18 = vector.broadcast %c255_i32 : i32 to vector<1x128xi32>
    %19 = arith.cmpi ne, %3, %18 : vector<1x128xi32>
    %20 = math.log %10 : vector<1x128xf32>
    %21 = arith.subf %20, %17 : vector<1x128xf32>
    %cst_8 = arith.constant 0.000000e+00 : f32
    %22 = vector.broadcast %cst_8 : f32 to vector<1x128xf32>
    %23 = arith.select %19, %21, %22 : vector<1x128xi1>, vector<1x128xf32>
    %c0_9 = arith.constant 0 : index
    %c0_10 = arith.constant 0 : index
    %c0_11 = arith.constant 0 : index
    %24 = vector.load %arg4[%c0_9, %c0_10, %c0_11] : memref<1x1x128xf32, #tpu.memory_space<vmem>>, vector<1x1x128xf32>
    %25 = vector.shape_cast %24 : vector<1x1x128xf32> to vector<1x128xf32>
    %26 = vector.shape_cast %23 : vector<1x128xf32> to vector<1x1x128xf32>
    tpu.vector_store %arg4[%c0_9, %c0_10, %c0_11], %26 {strides = array<i32>} : memref<1x1x128xf32, #tpu.memory_space<vmem>>, vector<1x1x128xf32>,
    %c128_i32 = arith.constant 128 : i32
    %27 = arith.muli %arg1, %c128_i32 : i32
    %28 = tpu.iota {dimensions = array<i32: 1>} : vector<1x128xi32>
    %29 = vector.broadcast %27 : i32 to vector<1x128xi32>
    %30 = arith.addi %29, %28 : vector<1x128xi32>
    %c256_i32 = arith.constant 256 : i32
    %31 = vector.broadcast %c256_i32 : i32 to vector<1x128xi32>
    %32 = arith.cmpi slt, %30, %31 : vector<1x128xi32>
    %33 = arith.andi %32, %19 : vector<1x128xi1>
    %cst_12 = arith.constant 0.356674939 : f32
    %34 = vector.broadcast %cst_12 : f32 to vector<1x128xf32>
    %35 = arith.cmpf ogt, %23, %34 : vector<1x128xf32>
    %36 = arith.andi %32, %35 : vector<1x128xi1>
    %37 = arith.extui %33 : vector<1x128xi1> to vector<1x128xi32>
    %38 = arith.sitofp %37 : vector<1x128xi32> to vector<1x128xf32>
    %39 = vector.shape_cast %38 : vector<1x128xf32> to vector<1x1x128xf32>
    %cst_13 = arith.constant dense<0.000000e+00> : vector<1xf32>
    %40 = vector.multi_reduction <add>, %39, %cst_13 [1, 2] : vector<1x1x128xf32> to vector<1xf32>
    %41 = vector.shape_cast %40 : vector<1xf32> to vector<1x1x1xf32>
    %42 = vector.extract %41[0, 0, 0] : f32 from vector<1x1x1xf32>
    %43 = arith.extui %36 : vector<1x128xi1> to vector<1x128xi32>
    %44 = arith.sitofp %43 : vector<1x128xi32> to vector<1x128xf32>
    %45 = vector.shape_cast %44 : vector<1x128xf32> to vector<1x1x128xf32>
    %cst_14 = arith.constant dense<0.000000e+00> : vector<1xf32>
    %46 = vector.multi_reduction <add>, %45, %cst_14 [1, 2] : vector<1x1x128xf32> to vector<1xf32>
    %47 = vector.shape_cast %46 : vector<1xf32> to vector<1x1x1xf32>
    %48 = vector.extract %47[0, 0, 0] : f32 from vector<1x1x1xf32>
    %cst_15 = arith.constant 0.000000e+00 : f32
    %49 = vector.broadcast %cst_15 : f32 to vector<1x128xf32>
    %50 = arith.select %36, %23, %49 : vector<1x128xi1>, vector<1x128xf32>
    %51 = vector.shape_cast %50 : vector<1x128xf32> to vector<1x1x128xf32>
    %cst_16 = arith.constant dense<0.000000e+00> : vector<1xf32>
    %52 = vector.multi_reduction <add>, %51, %cst_16 [1, 2] : vector<1x1x128xf32> to vector<1xf32>
    %53 = vector.shape_cast %52 : vector<1xf32> to vector<1x1x1xf32>
    %54 = vector.extract %53[0, 0, 0] : f32 from vector<1x1x1xf32>
    %55 = tpu.iota {dimensions = array<i32: 1>} : vector<8x128xi32>
    %c0_i32 = arith.constant 0 : i32
    %56 = vector.broadcast %c0_i32 : i32 to vector<8x128xi32>
    %57 = arith.cmpi eq, %55, %56 : vector<8x128xi32>
    %c1_i32 = arith.constant 1 : i32
    %58 = vector.broadcast %c1_i32 : i32 to vector<8x128xi32>
    %59 = arith.cmpi eq, %55, %58 : vector<8x128xi32>
    %c2_i32 = arith.constant 2 : i32
    %60 = vector.broadcast %c2_i32 : i32 to vector<8x128xi32>
    %61 = arith.cmpi eq, %55, %60 : vector<8x128xi32>
    %cst_17 = arith.constant 0.000000e+00 : f32
    %62 = vector.broadcast %54 : f32 to vector<8x128xf32>
    %63 = vector.broadcast %cst_17 : f32 to vector<8x128xf32>
    %64 = arith.select %61, %62, %63 : vector<8x128xi1>, vector<8x128xf32>
    %65 = vector.broadcast %48 : f32 to vector<8x128xf32>
    %66 = arith.select %59, %65, %64 : vector<8x128xi1>, vector<8x128xf32>
    %67 = vector.broadcast %42 : f32 to vector<8x128xf32>
    %68 = arith.select %57, %67, %66 : vector<8x128xi1>, vector<8x128xf32>
    %c0_18 = arith.constant 0 : index
    %c0_19 = arith.constant 0 : index
    %c0_20 = arith.constant 0 : index
    %c0_21 = arith.constant 0 : index
    %69 = vector.load %arg5[%c0_18, %c0_19, %c0_20, %c0_21] : memref<1x1x8x128xf32, #tpu.memory_space<vmem>>, vector<1x1x8x128xf32>
    %70 = vector.shape_cast %69 : vector<1x1x8x128xf32> to vector<8x128xf32>
    %71 = vector.shape_cast %68 : vector<8x128xf32> to vector<1x1x8x128xf32>
    tpu.vector_store %arg5[%c0_18, %c0_19, %c0_20, %c0_21], %71 {strides = array<i32>} : memref<1x1x8x128xf32, #tpu.memory_space<vmem>>, vector<1x1x8x128xf32>,
    return
  }
  func.func @transform_0(%arg0: i32, %arg1: i32) -> (i32, i32, i32) {
    %c0_i32 = arith.constant 0 : i32
    %c0_i32_0 = arith.constant 0 : i32
    return %arg0, %c0_i32, %arg1 : i32, i32, i32
  }
  func.func @transform_1(%arg0: i32, %arg1: i32) -> (i32, i32, i32) {
    %c0_i32 = arith.constant 0 : i32
    %c0_i32_0 = arith.constant 0 : i32
    return %arg0, %c0_i32, %arg1 : i32, i32, i32
  }
  func.func @transform_2(%arg0: i32, %arg1: i32) -> (i32, i32, i32) {
    %c0_i32 = arith.constant 0 : i32
    %c0_i32_0 = arith.constant 0 : i32
    return %arg0, %c0_i32, %arg1 : i32, i32, i32
  }
  func.func @transform_3(%arg0: i32, %arg1: i32) -> (i32, i32, i32, i32) {
    %c0_i32 = arith.constant 0 : i32
    %c0_i32_0 = arith.constant 0 : i32
    %c0_i32_1 = arith.constant 0 : i32
    return %arg0, %arg1, %c0_i32, %c0_i32_0 : i32, i32, i32, i32
  }
}

</mosaic_0001>

<bundles_post_ra>
// kernel: ohem_ce_loss.1
= control target key start
LH: loop header
LB: loop body
LE: loop exit
PB: predicated region body
PF: predicated region fallthrough
CT: control target
= control target key end

     0   :  { %s615_s12 = smov 0   ;;  %s617_s13 = smov 0   ;;  %s694_s0 = inlined_call_operand.vmem [shape: f32[2,4,256], index: 0, kind: input, shape index: {}]   ;;  %s695_s1 = inlined_call_operand.vmem [shape: s32[2,1,256], index: 1, kind: input, shape index: {}]   ;;  %s696_s2 = inlined_call_operand.vmem [shape: f32[2,1,256], index: 2, kind: output, shape index: {0}]   ;;  %s697_s3 = inlined_call_operand.vmem [shape: f32[2,2,8,128], index: 3, kind: output, shape index: {1}]  }
   0x1   :  { %s619_s14 = smov 0   ;;  %s621_s15 = smov 0  }
   0x2   :  { %s623_s16 = smov 0  }
   0x3 LB: > { %s23_s17 = sadd.s32 1, %s584_s14  ;;  %s26_s18 = sadd.s32 1, %s588_s15  ;;  %s592_s16 = sphi %s623_s16, %s14_s16   ;;  %s588_s15 = sphi %s621_s15, %s701_s15   ;;  %s584_s14 = sphi %s619_s14, %s700_s14   ;;  %s580_s13 = sphi %s617_s13, %s699_s13   ;;  %s576_s12 = sphi %s615_s12, %s698_s12  }
   0x4   : > { %p24_p0 = scmp.ge.s32.totalorder %s23_s17, 2  ;;  %p491_p1 = scmp.ge.s32.totalorder %s592_s16, 1 }
   0x5   : > { %p175_p2 = scmp.lt.s32.totalorder %s592_s16, 5 }
   0x6   : > { %s703_s17 = smov (%p24_p0, %s23_s17), 0  ;;  %s705_s18 = smov (!%p24_p0, %s26_s18), %s588_s15 }
   0x7   : > { %p176_p3 = pnand %p491_p1, %p175_p2  ;;  %p28_p4 = scmp.ge.s32.totalorder %s705_s18, 2 }
   0x8   : > { %p219_p5 = scmp.lt.s32.totalorder (!%p176_p3), %s580_s13, 1  ;;  %p221_p6 = scmp.lt.s32.totalorder (!%p176_p3), %s576_s12, 1  ;;  %v269_v0 = vlaneseq (!%p176_p3)  ;;  %vm251_vm0 = vcmask (!%p176_p3), 1043456   ;;  %vm301_vm3 = vcmask (!%p176_p3), 1040384   ;;  %v594_v7 = vmov (!%p176_p3), 0.0  }
   0x9   : > { %s707_s18 = smov (%p28_p4, %s705_s18), 0  ;;  %179 = sbr.rel (%p176_p3) target bundleno = 293 (0x125), region = 28 }
   0xa   : > { %s498_s19 = sshll.u32 (!%p176_p3), %s576_s12, 7  ;;  %v645_v1 = vand.u32 (!%p176_p3), 127, %v269_v0  ;;  %v270_v14 = vshrl.u32 (!%p176_p3), %v269_v0, 7 }
   0xb   : > { %v293_v2 = vstv (!%p176_p3), %s498_s19 }
   0xc   : > { %v294_v3 = vadd.s32 (!%p176_p3), %v293_v2, %v645_v1  ;;  %v273_v17 = vsub.s32 (!%p176_p3), 0, %v270_v14  ;;  %vm337_vm8 = vcmp.eq.s32.totalorder (!%p176_p3), %v645_v1, 2  ;;  %vm336_vm9 = vcmp.eq.s32.totalorder (!%p176_p3), %v645_v1, 1 }
   0xd   : > { %vm335_vm10 = vcmp.eq.s32.totalorder (!%p176_p3), %v645_v1, 0 }
   0xe   : > { %vm295_vm1 = vcmp.lt.s32.totalorder (!%p176_p3), %v294_v3, 256 }
  0x10   : > { %s709_s13 = smov (!%p219_p5, %s580_s13), 1  ;;  %s711_s12 = smov (!%p221_p6, %s576_s12), 1 }
  0x11   : > { %s492_s20 = sshll.u32 %s709_s13, 1 }
  0x12   : > { %s648_s21 = sadd.s32 %s492_s20, %s711_s12 }
  0x13   : > { %s233_s24 = scalar_lea.vmem %s695_s1, %s648_s21  ;;  %s493_s25 = sshll.u32 %s648_s21, 2 }
  0x14   : > { %v250_v4 = vld [vmem:[%s233_s24] sm:$0x1]  ;;  %s226_s28 = scalar_lea.vmem %s694_s0, %s493_s25  ;;  %s240_s4 = scalar_lea.vmem %s696_s2, %s648_s21 }
  0x15   : > { %vm284_vm2 = vcmp.ne.s32.totalorder %v250_v4, 255  ;;  %v249_v5 = vld [vmem:[%s226_s28] sm:$0xf]  ;;  %v274_v20 = vrot.slane %v250_v4, %v273_v17  ;;  %s497_s7 = sshll.u32 %s648_s21, 3 }
  0x16   : > { %vm296_vm4 = vmand %vm295_vm1, %vm284_vm2  ;;  %v252_v6 = vsel %vm251_vm0, %v249_v5, -inf  ;;  %s248_s11 = scalar_lea.vmem %s697_s3, %s497_s7 }
  0x17   : > { %v499_v8 = vsel %vm296_vm4, 1.0, %v594_v7  ;;  %v253_v9 = vrot.slane %v252_v6, 4  ;;  %vm275_vm5 = vcmp.eq.s32.totalorder %v270_v14, %v274_v20 }
  0x18   : > { %v302_v10 = vsel %vm301_vm3, %v499_v8, 0.0 }
  0x19   : > { %303 = vadd.xlane.f32.xlu0 %v302_v10  ;;  %v254_v11 = vmax.f32 %v252_v6, %v253_v9 }
  0x1b   : > { %v255_v12 = vrot.slane %v254_v11, 2 }
  0x1d   : > { %v256_v13 = vmax.f32 %v254_v11, %v255_v12 }
  0x1f   : > { %v257_v15 = vrot.slane %v256_v13, 1 }
  0x21   : > { %v258_v16 = vmax.f32 %v256_v13, %v257_v15 }
  0x23   : > { %v259_v18 = vsub.f32 %v249_v5, %v258_v16 }
  0x25   : > { %v260_v19 = vmul.f32 1.442695, %v259_v18  ;;  %v276_v21 = vsel %vm275_vm5, %v259_v18, 0.0 }
  0x26   : > { %v277_v23 = vsel %vm251_vm0, %v276_v21, 0.0 }
  0x27   : > { %550 = vpow2.f32 %v260_v19  ;;  %v278_v26 = vrot.slane %v277_v23, 4 }
  0x29   : > { %v279_v29 = vadd.f32 %v278_v26, %v277_v23 }
  0x2b   : > { %v280_v32 = vrot.slane %v279_v29, 2 }
  0x2d   : > { %v281_v34 = vadd.f32 %v280_v32, %v279_v29 }
  0x2f   : > { %v282_v35 = vrot.slane %v281_v34, 1 }
  0x31   : > { %v551_v22 = vpop.eup %550  ;;  %v283_v36 = vadd.f32 %v282_v35, %v281_v34 }
  0x32   : > { %v262_v24 = vsel %vm251_vm0, %v551_v22, 0.0 }
  0x33   : > { %v263_v25 = vrot.slane %v262_v24, 4 }
  0x35   : > { %v264_v27 = vadd.f32 %v263_v25, %v262_v24 }
  0x37   : > { %v265_v28 = vrot.slane %v264_v27, 2 }
  0x39   : > { %v266_v30 = vadd.f32 %v265_v28, %v264_v27 }
  0x3b   : > { %v267_v31 = vrot.slane %v266_v30, 1 }
  0x3d   : > { %v268_v33 = vadd.f32 %v267_v31, %v266_v30 }
  0x3f   : > { %552 = vlog2.f32 %v268_v33 }
  0x49   : > { %v553_v37 = vpop.eup %552 }
  0x4a   : > { %v286_v38 = vmul.f32 0.6931472, %v553_v37 }
  0x4c   : > { %v287_v39 = vsub.f32 %v286_v38, %v283_v36 }
  0x4e   : > { %v288_v40 = vsel %vm284_vm2, %v287_v39, 0.0 }
  0x4f   : > { %vm297_vm6 = vcmp.gt.f32.partialorder %v288_v40, 0.35667494  ;;  %289 = vst [vmem:[%s240_s4] sm:$0x1] %v288_v40 }
  0x50   : > { %vm298_vm7 = vmand %vm295_vm1, %vm297_vm6 }
  0x51   : > { %v324_v41 = vsel %vm298_vm7, %v288_v40, 0.0  ;;  %v500_v42 = vsel %vm298_vm7, 1.0, %v594_v7 }
  0x52   : > { %v325_v43 = vsel %vm301_vm3, %v324_v41, 0.0  ;;  %v314_v44 = vsel %vm301_vm3, %v500_v42, 0.0 }
  0x53   : > { %326 = vadd.xlane.f32.xlu1 %v325_v43  ;;  %315 = vadd.xlane.f32.xlu0 %v314_v44 }
  0xa6   : > { %v304_v45 = vpop.xlane.xlu0 %303 }
  0xa7   : > { %v305_v46 = vrot.slane %v304_v45, 4 }
  0xa9   : > { %v306_v47 = vadd.f32 %v305_v46, %v304_v45 }
  0xab   : > { %v307_v48 = vrot.slane %v306_v47, 2 }
  0xad   : > { %v308_v49 = vadd.f32 %v307_v48, %v306_v47 }
  0xaf   : > { %v309_v50 = vrot.slane %v308_v49, 1 }
  0xb1   : > { %v310_v51 = vadd.f32 %v309_v50, %v308_v49 }
  0xb3   : > { %503 = vpush %v310_v51 }
  0xe0   : > { %v327_v52 = vpop.xlane.xlu1 %326  ;;  %v316_v53 = vpop.xlane.xlu0 %315 }
  0xe1   : > { %v328_v54 = vrot.slane %v327_v52, 4  ;;  %v317_v55 = vrot.slane %v316_v53, 4 }
  0xe3   : > { %v329_v56 = vadd.f32 %v328_v54, %v327_v52  ;;  %v318_v57 = vadd.f32 %v317_v55, %v316_v53 }
  0xe4   : > { %s504_s5 = spop %503 }
  0xe5   : > { %v330_v58 = vrot.slane %v329_v56, 2  ;;  %v319_v59 = vrot.slane %v318_v57, 2  ;;  %v342_v6 = vstv %s504_s5 }
  0xe7   : > { %v331_v60 = vadd.f32 %v330_v58, %v329_v56  ;;  %v320_v61 = vadd.f32 %v319_v59, %v318_v57 }
  0xe9   : > { %v321_v62 = vrot.slane %v320_v61, 1  ;;  %v332_v63 = vrot.slane %v331_v60, 1 }
  0xeb   : > { %v322_v0 = vadd.f32 %v321_v62, %v320_v61  ;;  %v333_v2 = vadd.f32 %v332_v63, %v331_v60 }
  0xed   : > { %505 = vpush %v322_v0 }
  0xee   : > { %507 = vpush %v333_v2 }
 0x11e   : > { %s506_s6 = spop %505 }
 0x11f   : > { %v340_v3 = vstv %s506_s6  ;;  %s508_s8 = spop %507 }
 0x120   : > { %v338_v4 = vstv %s508_s8 }
 0x121   : > { %v339_v5 = vsel %vm337_vm8, %v338_v4, 0.0 }
 0x122   : > { %v341_v7 = vsel %vm336_vm9, %v340_v3, %v339_v5 }
 0x123   : > { %v343_v8 = vsel %vm335_vm10, %v342_v6, %v341_v7 }
 0x124   : > { %344 = vst [vmem:[%s248_s11] sm:$0xff] %v343_v8 }
 0x125 PF: > { %s14_s16 = sadd.s32 1, %s592_s16   ;;  %s698_s12 = smov %s584_s14 }
 0x126   : > { %p11_p7 = scmp.ge.s32.totalorder %s14_s16, 6   ;;  %s699_s13 = smov %s588_s15 }
 0x127   : > { %s700_s14 = smov %s703_s17  ;;  %s701_s15 = smov %s707_s18 }
 0x128   :  { %13 = sbr.rel (!%p11_p7) target bundleno = 3 (0x3), region = 73 }

</bundles_post_ra>
